<compile_context>
chip_gen: v6e
topology: v6e:2x2x1
jax: 0.10.0
libtpu: 0.0.40
codegen_flags: <defaults>
</compile_context>

<pallas_src>
import jax
import jax.numpy as jnp
from jax import lax
from jax.experimental import pallas as pl
from jax.experimental.pallas import tpu as pltpu


def _round_up(v, m):
    return ((v + m - 1) // m) * m


def _num_tensorcores():
    """Best-effort TensorCore count (v7x has 2); falls back to 1."""
    try:
        info = pltpu.get_tpu_info()
    except Exception:
        return 1
    for name in ("num_cores", "core_count", "tensorcore_count", "num_tensorcores"):
        n = getattr(info, name, None)
        if isinstance(n, int) and n > 0:
            return n
    return 1


def _sigmoid(z):
    # Single EUP transcendental; the 0.5*/+1 lands on the (idle) VPU.
    return 0.5 * (1.0 + jnp.tanh(0.5 * z))


def mlp_kernel(x_ref, w1_ref, b1_ref, w2_ref, b2_ref, w3_ref, b3_ref, o_ref):
    """Fused 3-layer MLP: x is batch-major; hidden activations feature-major."""
    x = x_ref[...]                                  # [tile_b, n_in] f32 or bf16
    w1 = w1_ref[...]
    if w1.dtype != x.dtype:
        w1 = w1.astype(x.dtype)                     # tiny cast; x stays untouched

    # Layer 1: h1[f, b] = sum_d w1[f, d] * x[b, d]  (contract both minor dims;
    # output is feature-major with batch on the lane axis).
    z1 = lax.dot_general(
        w1, x,
        dimension_numbers=(((1,), (1,)), ((), ())),
        preferred_element_type=jnp.float32,
    ) + b1_ref[...]                                 # [15, tile_b]
    h1 = _sigmoid(z1)

    z2 = jnp.dot(w2_ref[...], h1, preferred_element_type=jnp.float32) + b2_ref[...]
    h2 = _sigmoid(z2)                               # [8, tile_b]

    z3 = jnp.dot(w3_ref[...], h2, preferred_element_type=jnp.float32) + b3_ref[...]
    o_ref[...] = _sigmoid(z3).astype(o_ref.dtype)   # [1, tile_b]  -- lane-dense


def red_forward(x, params, *, tile_b=None, vmem_budget_bytes=20 << 20):
    """x: [B, n_in] (f32 or bf16).  params: PyTorch-layout W [out,in], bias [out,1]."""
    B, n_in = x.shape
    w1, b1 = params["w1"], params["b1"]             # [15, n_in], [15, 1]
    w2, b2 = params["w2"], params["b2"]             # [8, 15],    [8, 1]
    w3, b3 = params["w3"], params["b3"]             # [1, 8],     [1, 1]

    x_bytes = jnp.dtype(x.dtype).itemsize
    # Approximate per-row VMEM: 2x-buffered x tile + f32 h1/h2/y (+ slack).
    per_row = 2 * n_in * x_bytes + 320

    if tile_b is None:
        tile_b = vmem_budget_bytes // per_row
    tile_b = max(128, (int(tile_b) // 128) * 128)
    tile_b = min(tile_b, 32768)
    # Small batches: one minimal tile (rounded up to the 128-lane output slab)...
    tile_b = min(tile_b, _round_up(B, 128))
    # ...unless this chip has >1 TensorCore (v7x), in which case give each core work.
    n_cores = _num_tensorcores()
    if n_cores > 1 and 1024 < B <= tile_b:
        tile_b = _round_up(pl.cdiv(B, n_cores), 128)

    grid = (pl.cdiv(B, tile_b),)                    # partial last block is masked

    # Explicit scoped-VMEM limit: big tiles must also clear v5e's 16 MiB default;
    # cap below v7x's 64 MiB physical VMEM.
    est_bytes = tile_b * per_row + (2 << 20)
    vmem_limit = int(min(max(32 << 20, est_bytes), 56 << 20))

    full2d = lambda a: pl.BlockSpec(a.shape, lambda i: (0, 0))

    out = pl.pallas_call(
        mlp_kernel,
        out_shape=jax.ShapeDtypeStruct((1, B), jnp.float32),
        grid_spec=pltpu.PrefetchScalarGridSpec(
            num_scalar_prefetch=0,
            grid=grid,
            in_specs=[
                pl.BlockSpec((tile_b, n_in), lambda i: (i, 0)),   # x, batch-major
                full2d(w1), full2d(b1),
                full2d(w2), full2d(b2),
                full2d(w3), full2d(b3),
            ],
            out_specs=pl.BlockSpec((1, tile_b), lambda i: (0, i)),  # lane-dense
        ),
        compiler_params=pltpu.CompilerParams(
            dimension_semantics=("parallel",),
            vmem_limit_bytes=vmem_limit,
        ),
    )(x, w1, b1, w2, b2, w3, b3)

    return out.reshape(B, 1)


def init_params(key, n_entradas):
    """Synthetic init matching nn.Linear shapes: W [out, in], bias as [out, 1]."""
    ks = jax.random.split(key, 6)

    def lin(kw, kb, n_in, n_out):
        bound = 1.0 / jnp.sqrt(n_in)
        w = jax.random.uniform(kw, (n_out, n_in), jnp.float32, -bound, bound)
        b = jax.random.uniform(kb, (n_out, 1), jnp.float32, -bound, bound)
        return w, b

    w1, b1 = lin(ks[0], ks[1], n_entradas, 15)
    w2, b2 = lin(ks[2], ks[3], 15, 8)
    w3, b3 = lin(ks[4], ks[5], 8, 1)
    return {"w1": w1, "b1": b1, "w2": w2, "b2": b2, "w3": w3, "b3": b3}


def red_forward_ref(x, p):
    x = x.astype(jnp.float32)
    h1 = jax.nn.sigmoid(x @ p["w1"].T + p["b1"].T)
    h2 = jax.nn.sigmoid(h1 @ p["w2"].T + p["b2"].T)
    return jax.nn.sigmoid(h2 @ p["w3"].T + p["b3"].T)


if __name__ == "__main__":
    key = jax.random.PRNGKey(0)
    k_x1, k_x2, k_p = jax.random.split(key, 3)

    n_entradas = 32
    params = init_params(k_p, n_entradas)

    # Case 1: tiny batch -> single (partial) 128-row tile, no wrapper padding.
    x1 = jax.random.normal(k_x1, (8, n_entradas), jnp.float32)
    out1 = jax.block_until_ready(red_forward(x1, params))
    ref1 = red_forward_ref(x1, params)
    assert out1.shape == (8, 1)
    # Tolerance covers default-precision MXU f32 matmul differences vs. XLA ref.
    assert jnp.allclose(out1, ref1, atol=2e-3, rtol=2e-3), "mismatch (case 1)"

    # Case 2: multi-step grid with a masked partial last block (300 = 2*128 + 44).
    x2 = jax.random.normal(k_x2, (300, n_entradas), jnp.float32)
    out2 = jax.block_until_ready(red_forward(x2, params, tile_b=128))
    ref2 = red_forward_ref(x2, params)
    assert out2.shape == (300, 1)
    assert jnp.allclose(out2, ref2, atol=2e-3, rtol=2e-3), "mismatch (case 2)"

    # Case 3: bf16 input path (x fed to the MXU directly; only w1 is cast in-kernel).
    x3 = x2.astype(jnp.bfloat16)
    out3 = jax.block_until_ready(red_forward(x3, params, tile_b=128))
    ref3 = red_forward_ref(x3, params)
    assert out3.shape == (300, 1)
    assert jnp.allclose(out3, ref3, atol=3e-2, rtol=3e-2), "mismatch (case 3, bf16)"

    print("KERNEL_OK")
</pallas_src>

<mosaic_0001>
module attributes {stable_mosaic.version = 11 : i64} {
  func.func @mlp_kernel(%arg0: i32, %arg1: memref<128x32xf32, #tpu.memory_space<vmem>>, %arg2: memref<15x32xf32, #tpu.memory_space<vmem>>, %arg3: memref<15x1xf32, #tpu.memory_space<vmem>>, %arg4: memref<8x15xf32, #tpu.memory_space<vmem>>, %arg5: memref<8x1xf32, #tpu.memory_space<vmem>>, %arg6: memref<1x8xf32, #tpu.memory_space<vmem>>, %arg7: memref<1x1xf32, #tpu.memory_space<vmem>>, %arg8: memref<1x128xf32, #tpu.memory_space<vmem>>) attributes {dimension_semantics = [#tpu.dimension_semantics<parallel>], iteration_bounds = array<i64: 1>, scalar_prefetch = 0 : i64, scratch_operands = 0 : i64, tpu.core_type = #tpu.core_type<tc>, window_params = [{transform_indices = @transform_0, window_bounds = array<i64: 128, 32>}, {pipeline_mode = #tpu.pipeline_mode<synchronous>, transform_indices = @transform_1, window_bounds = array<i64: 15, 32>}, {pipeline_mode = #tpu.pipeline_mode<synchronous>, transform_indices = @transform_2, window_bounds = array<i64: 15, 1>}, {pipeline_mode = #tpu.pipeline_mode<synchronous>, transform_indices = @transform_3, window_bounds = array<i64: 8, 15>}, {pipeline_mode = #tpu.pipeline_mode<synchronous>, transform_indices = @transform_4, window_bounds = array<i64: 8, 1>}, {pipeline_mode = #tpu.pipeline_mode<synchronous>, transform_indices = @transform_5, window_bounds = array<i64: 1, 8>}, {pipeline_mode = #tpu.pipeline_mode<synchronous>, transform_indices = @transform_6, window_bounds = array<i64: 1, 1>}, {transform_indices = @transform_7, window_bounds = array<i64: 1, 128>}]} {
    %c0 = arith.constant 0 : index
    %c0_0 = arith.constant 0 : index
    %0 = vector.load %arg1[%c0, %c0_0] : memref<128x32xf32, #tpu.memory_space<vmem>>, vector<128x32xf32>
    %c0_1 = arith.constant 0 : index
    %c0_2 = arith.constant 0 : index
    %1 = vector.load %arg2[%c0_1, %c0_2] : memref<15x32xf32, #tpu.memory_space<vmem>>, vector<15x32xf32>
    %cst = arith.constant dense<0.000000e+00> : vector<15x128xf32>
    %2 = tpu.matmul %1, %0, %cst {dimension_numbers = #tpu.dot_dimension_numbers<[1], [1], [0], [0], [0, 0, 1, 0], [], []>} : vector<15x32xf32>, vector<128x32xf32>, vector<15x128xf32> -> vector<15x128xf32>
    %c0_3 = arith.constant 0 : index
    %c0_4 = arith.constant 0 : index
    %3 = vector.load %arg3[%c0_3, %c0_4] : memref<15x1xf32, #tpu.memory_space<vmem>>, vector<15x1xf32>
    %4 = vector.broadcast %3 : vector<15x1xf32> to vector<15x128xf32>
    %5 = arith.addf %2, %4 : vector<15x128xf32>
    %cst_5 = arith.constant 5.000000e-01 : f32
    %6 = vector.broadcast %cst_5 : f32 to vector<15x128xf32>
    %7 = arith.mulf %6, %5 : vector<15x128xf32>
    %8 = math.tanh %7 : vector<15x128xf32>
    %cst_6 = arith.constant 1.000000e+00 : f32
    %9 = vector.broadcast %cst_6 : f32 to vector<15x128xf32>
    %10 = arith.addf %9, %8 : vector<15x128xf32>
    %cst_7 = arith.constant 5.000000e-01 : f32
    %11 = vector.broadcast %cst_7 : f32 to vector<15x128xf32>
    %12 = arith.mulf %11, %10 : vector<15x128xf32>
    %c0_8 = arith.constant 0 : index
    %c0_9 = arith.constant 0 : index
    %13 = vector.load %arg4[%c0_8, %c0_9] : memref<8x15xf32, #tpu.memory_space<vmem>>, vector<8x15xf32>
    %cst_10 = arith.constant dense<0.000000e+00> : vector<8x128xf32>
    %14 = tpu.matmul %13, %12, %cst_10 {dimension_numbers = #tpu.dot_dimension_numbers<[1], [0], [0], [1], [0, 0, 1, 1], [], []>} : vector<8x15xf32>, vector<15x128xf32>, vector<8x128xf32> -> vector<8x128xf32>
    %c0_11 = arith.constant 0 : index
    %c0_12 = arith.constant 0 : index
    %15 = vector.load %arg5[%c0_11, %c0_12] : memref<8x1xf32, #tpu.memory_space<vmem>>, vector<8x1xf32>
    %16 = vector.broadcast %15 : vector<8x1xf32> to vector<8x128xf32>
    %17 = arith.addf %14, %16 : vector<8x128xf32>
    %cst_13 = arith.constant 5.000000e-01 : f32
    %18 = vector.broadcast %cst_13 : f32 to vector<8x128xf32>
    %19 = arith.mulf %18, %17 : vector<8x128xf32>
    %20 = math.tanh %19 : vector<8x128xf32>
    %cst_14 = arith.constant 1.000000e+00 : f32
    %21 = vector.broadcast %cst_14 : f32 to vector<8x128xf32>
    %22 = arith.addf %21, %20 : vector<8x128xf32>
    %cst_15 = arith.constant 5.000000e-01 : f32
    %23 = vector.broadcast %cst_15 : f32 to vector<8x128xf32>
    %24 = arith.mulf %23, %22 : vector<8x128xf32>
    %c0_16 = arith.constant 0 : index
    %c0_17 = arith.constant 0 : index
    %25 = vector.load %arg6[%c0_16, %c0_17] : memref<1x8xf32, #tpu.memory_space<vmem>>, vector<1x8xf32>
    %cst_18 = arith.constant dense<0.000000e+00> : vector<1x128xf32>
    %26 = tpu.matmul %25, %24, %cst_18 {dimension_numbers = #tpu.dot_dimension_numbers<[1], [0], [0], [1], [0, 0, 1, 1], [], []>} : vector<1x8xf32>, vector<8x128xf32>, vector<1x128xf32> -> vector<1x128xf32>
    %c0_19 = arith.constant 0 : index
    %c0_20 = arith.constant 0 : index
    %27 = vector.load %arg7[%c0_19, %c0_20] : memref<1x1xf32, #tpu.memory_space<vmem>>, vector<1x1xf32>
    %28 = vector.broadcast %27 : vector<1x1xf32> to vector<1x128xf32>
    %29 = arith.addf %26, %28 : vector<1x128xf32>
    %cst_21 = arith.constant 5.000000e-01 : f32
    %30 = vector.broadcast %cst_21 : f32 to vector<1x128xf32>
    %31 = arith.mulf %30, %29 : vector<1x128xf32>
    %32 = math.tanh %31 : vector<1x128xf32>
    %cst_22 = arith.constant 1.000000e+00 : f32
    %33 = vector.broadcast %cst_22 : f32 to vector<1x128xf32>
    %34 = arith.addf %33, %32 : vector<1x128xf32>
    %cst_23 = arith.constant 5.000000e-01 : f32
    %35 = vector.broadcast %cst_23 : f32 to vector<1x128xf32>
    %36 = arith.mulf %35, %34 : vector<1x128xf32>
    %c0_24 = arith.constant 0 : index
    %c0_25 = arith.constant 0 : index
    %37 = vector.load %arg8[%c0_24, %c0_25] : memref<1x128xf32, #tpu.memory_space<vmem>>, vector<1x128xf32>
    tpu.vector_store %arg8[%c0_24, %c0_25], %36 {strides = array<i32>} : memref<1x128xf32, #tpu.memory_space<vmem>>, vector<1x128xf32>,
    return
  }
  func.func @transform_0(%arg0: i32) -> (i32, i32) {
    %c0_i32 = arith.constant 0 : i32
    %c0_i32_0 = arith.constant 0 : i32
    return %arg0, %c0_i32 : i32, i32
  }
  func.func @transform_1(%arg0: i32) -> (i32, i32) {
    %c0_i32 = arith.constant 0 : i32
    %c0_i32_0 = arith.constant 0 : i32
    %c0_i32_1 = arith.constant 0 : i32
    return %c0_i32, %c0_i32_0 : i32, i32
  }
  func.func @transform_2(%arg0: i32) -> (i32, i32) {
    %c0_i32 = arith.constant 0 : i32
    %c0_i32_0 = arith.constant 0 : i32
    %c0_i32_1 = arith.constant 0 : i32
    return %c0_i32, %c0_i32_0 : i32, i32
  }
  func.func @transform_3(%arg0: i32) -> (i32, i32) {
    %c0_i32 = arith.constant 0 : i32
    %c0_i32_0 = arith.constant 0 : i32
    %c0_i32_1 = arith.constant 0 : i32
    return %c0_i32, %c0_i32_0 : i32, i32
  }
  func.func @transform_4(%arg0: i32) -> (i32, i32) {
    %c0_i32 = arith.constant 0 : i32
    %c0_i32_0 = arith.constant 0 : i32
    %c0_i32_1 = arith.constant 0 : i32
    return %c0_i32, %c0_i32_0 : i32, i32
  }
  func.func @transform_5(%arg0: i32) -> (i32, i32) {
    %c0_i32 = arith.constant 0 : i32
    %c0_i32_0 = arith.constant 0 : i32
    %c0_i32_1 = arith.constant 0 : i32
    return %c0_i32, %c0_i32_0 : i32, i32
  }
  func.func @transform_6(%arg0: i32) -> (i32, i32) {
    %c0_i32 = arith.constant 0 : i32
    %c0_i32_0 = arith.constant 0 : i32
    %c0_i32_1 = arith.constant 0 : i32
    return %c0_i32, %c0_i32_0 : i32, i32
  }
  func.func @transform_7(%arg0: i32) -> (i32, i32) {
    %c0_i32 = arith.constant 0 : i32
    %c0_i32_0 = arith.constant 0 : i32
    return %c0_i32, %arg0 : i32, i32
  }
}

</mosaic_0001>

<bundles_post_ra>
// kernel: tpu_custom_call.1
= control target key start
LH: loop header
LB: loop body
LE: loop exit
PB: predicated region body
PF: predicated region fallthrough
CT: control target
= control target key end

     0   :  { %s672_s0 = inlined_call_operand.vmem [shape: f32[8,32], index: 0, kind: input, shape index: {}]   ;;  %s673_s1 = inlined_call_operand.vmem [shape: f32[15,32], index: 1, kind: input, shape index: {}]   ;;  %s674_s2 = inlined_call_operand.vmem [shape: f32[15,1], index: 2, kind: input, shape index: {}]   ;;  %s675_s3 = inlined_call_operand.vmem [shape: f32[8,15], index: 3, kind: input, shape index: {}]   ;;  %s676_s4 = inlined_call_operand.vmem [shape: f32[8,1], index: 4, kind: input, shape index: {}]   ;;  %s677_s5 = inlined_call_operand.vmem [shape: f32[1,8], index: 5, kind: input, shape index: {}]   ;;  %s678_s6 = inlined_call_operand.<no memory space> [shape: f32[1,1], index: 6, kind: input, shape index: {}]   ;;  %s679_s7 = inlined_call_operand.hbm [shape: f32[1,8], index: 7, kind: output, shape index: {}]  }
   0x1   :  { %v12_v0 = vstv %s678_s6 }
   0x2   :  { %13 = vst [vmem:[#allocation2] sm:$0x1] %v12_v0 }
   0x3   :  { %v44_v1 = vld [vmem:[%s672_s0 + $0x78] sm:$0xff]  ;;  %vm59_vm0 = vcmask 261120   ;;  %v43_v2 = vld [vmem:[%s672_s0 + $0x70] sm:$0xff]  ;;  %v517_v3 = vmov 0   ;;  %v42_v4 = vld [vmem:[%s672_s0 + $0x68] sm:$0xff] }
   0x4   :  { %434 = vmatprep.subr.msk.mxu0 %vm59_vm0, %v44_v1  ;;  %485 = vset.pattern.permute.xlu0 %v517_v3  ;;  %v45_v5 = vld [vmem:[%s673_s1] sm:$0xff]  ;;  %v48_v6 = vld [vmem:[%s674_s2 + $0x8] sm:$0x7f] }
   0x5   :  { %435 = vmatpush3.xpose.msk.msra.mxu0 %vm59_vm0, %v44_v1  ;;  %486 = vset.pattern.permute.xlu1 %v517_v3 }
   0x6   :  { %436 = vmatprep.subr.msk.mxu0 %vm59_vm0, %v43_v2  ;;  %466 = vmatprep.mubr.msk.f32.mxu0 %vm59_vm0, %v45_v5 }
   0x9   :  { %437 = vmatpush3.xpose.msk.msra.mxu0 %vm59_vm0, %v43_v2 }
   0xa   :  { %14 = vsyncpa [#allocation4], 0  ;;  %438 = vmatprep.subr.msk.mxu0 %vm59_vm0, %v42_v4  ;;  %56 = vperm.xlu0 %485, %v48_v6   ;;  %v41_v7 = vld [vmem:[%s672_s0 + $0x60] sm:$0xff]  ;;  %v40_v9 = vld [vmem:[%s672_s0 + $0x58] sm:$0xff]  ;;  %v518_v22 = vmov 0.0   ;;  %vm519_vm1 = vmmov 0   ;;  %v293_v49 = vlaneseq }
   0xb   :  { %v47_v8 = vld [vmem:[%s674_s2] sm:$0xff]  ;;  %v39_v10 = vld [vmem:[%s672_s0 + $0x50] sm:$0xff]  ;;  %v38_v11 = vld [vmem:[%s672_s0 + $0x48] sm:$0xff]  ;;  %469 = vmatprep.subr.mxu1 %v518_v22  ;;  %473 = vmatprep.mubr.msk.f32.mxu1 %vm519_vm1, %v518_v22  ;;  %vm208_vm2 = vcmask 1046528   ;;  %vm204_vm3 = vcmask 121856   ;;  %vm297_vm4 = vcmask 64512  }
   0xc   :  { %v37_v12 = vld [vmem:[%s672_s0 + $0x40] sm:$0xff]  ;;  %v36_v13 = vld [vmem:[%s672_s0 + $0x38] sm:$0xff]  ;;  %v35_v14 = vld [vmem:[%s672_s0 + $0x30] sm:$0xff]  ;;  %v294_v50 = vshrl.u32 %v293_v49, 7 }
   0xd   :  { %439 = vmatpush3.xpose.msk.msra.mxu0 %vm59_vm0, %v42_v4  ;;  %v34_v15 = vld [vmem:[%s672_s0 + $0x28] sm:$0xff]  ;;  %v33_v16 = vld [vmem:[%s672_s0 + $0x20] sm:$0xff]  ;;  %v32_v17 = vld [vmem:[%s672_s0 + $0x18] sm:$0xff] }
   0xe   :  { %440 = vmatprep.subr.msk.mxu0 %vm59_vm0, %v41_v7  ;;  %51 = vperm.xlu0 %485, %v47_v8   ;;  %v31_v18 = vld [vmem:[%s672_s0 + $0x10] sm:$0xff]  ;;  %v30_v19 = vld [vmem:[%s672_s0 + $0x8] sm:$0xff]  ;;  %v29_v20 = vld [vmem:[%s672_s0] sm:$0xff]  ;;  %v295_v51 = vsub.s32 0, %v294_v50 }
   0xf   :  { %v46_v21 = vld [vmem:[%s673_s1 + $0x8] sm:$0x7f]  ;;  %v198_v23 = vld [vmem:[%s676_s4] sm:$0xff] }
  0x10   :  { %201 = vperm.xlu1 %486, %v198_v23   ;;  %v287_v24 = vld [vmem:[#allocation2] sm:$0x1] }
  0x11   :  { %441 = vmatpush3.xpose.msk.msra.mxu0 %vm59_vm0, %v41_v7  ;;  %v197_v39 = vld [vmem:[%s675_s3] sm:$0xff]  ;;  %s520_s3 = smov [#allocation3]  }
  0x12   :  { %442 = vmatprep.subr.msk.mxu0 %vm59_vm0, %v40_v9  ;;  %v286_v48 = vld [vmem:[%s677_s5] sm:$0x1]  ;;  %s382_s2 = sshll.u32 %s520_s3, 4  ;;  %s383_s2 = int_to_ptr.vmem [resolvable:$true] %s382_s2 }
  0x13   :  { %s495_s5 = scalar_lea.vmem %s383_s2, 16  ;;  %s499_s20 = scalar_lea.vmem %s383_s2, 32 }
  0x14   :  { %290 = vperm.xlu1 %486, %v287_v24   ;;  %p496_p0 = scmp.ne.s32.totalorder %s383_s2, %s495_s5  ;;  %p500_p1 = scmp.lt.s32.totalorder %s383_s2, %s383_s2 }
  0x15   :  { %443 = vmatpush3.xpose.msk.msra.mxu0 %vm59_vm0, %v40_v9  ;;  %p501_p2 = scmp.lt.s32.totalorder %s499_s20, %s495_s5 }
  0x16   :  { %444 = vmatprep.subr.msk.mxu0 %vm59_vm0, %v39_v10 }
  0x17   :  { %p502_p3 = por %p501_p2, %p500_p1 }
  0x19   :  { %445 = vmatpush3.xpose.msk.msra.mxu0 %vm59_vm0, %v39_v10  ;;  %p503_p4 = pnand %p502_p3, %p496_p0 }
  0x1a   :  { %446 = vmatprep.subr.msk.mxu0 %vm59_vm0, %v38_v11 }
  0x1d   :  { %447 = vmatpush3.xpose.msk.msra.mxu0 %vm59_vm0, %v38_v11 }
  0x1e   :  { %448 = vmatprep.subr.msk.mxu0 %vm59_vm0, %v37_v12 }
  0x21   :  { %449 = vmatpush3.xpose.msk.msra.mxu0 %vm59_vm0, %v37_v12 }
  0x22   :  { %450 = vmatprep.subr.msk.mxu0 %vm59_vm0, %v36_v13 }
  0x25   :  { %451 = vmatpush3.xpose.msk.msra.mxu0 %vm59_vm0, %v36_v13 }
  0x26   :  { %452 = vmatprep.subr.msk.mxu0 %vm59_vm0, %v35_v14 }
  0x29   :  { %453 = vmatpush3.xpose.msk.msra.mxu0 %vm59_vm0, %v35_v14 }
  0x2a   :  { %454 = vmatprep.subr.msk.mxu0 %vm59_vm0, %v34_v15 }
  0x2d   :  { %455 = vmatpush3.xpose.msk.msra.mxu0 %vm59_vm0, %v34_v15 }
  0x2e   :  { %456 = vmatprep.subr.msk.mxu0 %vm59_vm0, %v33_v16 }
  0x31   :  { %457 = vmatpush3.xpose.msk.msra.mxu0 %vm59_vm0, %v33_v16 }
  0x32   :  { %458 = vmatprep.subr.msk.mxu0 %vm59_vm0, %v32_v17 }
  0x35   :  { %459 = vmatpush3.xpose.msk.msra.mxu0 %vm59_vm0, %v32_v17 }
  0x36   :  { %460 = vmatprep.subr.msk.mxu0 %vm59_vm0, %v31_v18 }
  0x39   :  { %461 = vmatpush3.xpose.msk.msra.mxu0 %vm59_vm0, %v31_v18 }
  0x3a   :  { %462 = vmatprep.subr.msk.mxu0 %vm59_vm0, %v30_v19 }
  0x3d   :  { %463 = vmatpush3.xpose.msk.msra.mxu0 %vm59_vm0, %v30_v19 }
  0x3e   :  { %464 = vmatprep.subr.msk.mxu0 %vm59_vm0, %v29_v20 }
  0x41   :  { %465 = vmatpush3.xpose.msk.msra.mxu0 %vm59_vm0, %v29_v20 }
  0x44   :  { %467 = vmatmul.mubr.msk.f32.vlgmr.msra.gmra.mxu0 %vm59_vm0, %v46_v21 }
  0x85   :  { %v57_v25 = vpop.permute.xlu0 %56 }
  0x89   :  { %v52_v28 = vpop.permute.xlu0 %51 }
  0x8b   :  { %v202_v40 = vpop.permute.xlu1 %201 }
  0x8f   :  { %v291_v52 = vpop.permute.xlu1 %290 }
  0x90   :  { %v296_v53 = vrot.slane %v291_v52, %v295_v51 }
 0x104   :  { %v468_v26 = vpop.f32.mrf.mxu0 }
 0x105   :  { %v186_v27 = vadd.f32 %v468_v26, %v57_v25 }
 0x106   :  { %v180_v29 = vpop.f32.mrf.mxu0 }
 0x107   :  { %v190_v30 = vmul.f32 0.5, %v186_v27  ;;  %v181_v31 = vadd.f32 %v180_v29, %v52_v28 }
 0x109   :  { %487 = vtanh.f32 %v190_v30  ;;  %v189_v32 = vmul.f32 0.5, %v181_v31 }
 0x10b   :  { %489 = vtanh.f32 %v189_v32 }
 0x116   :  { %v488_v33 = vpop.eup %487 }
 0x117   :  { %v194_v34 = vadd.f32 1.0, %v488_v33 }
 0x118   :  { %v490_v35 = vpop.eup %489 }
 0x119   :  { %v196_v36 = vmul.f32 0.5, %v194_v34  ;;  %v193_v37 = vadd.f32 1.0, %v490_v35 }
 0x11b   :  { %470 = vmatpush3.msk.msra.mxu1 %vm208_vm2, %v196_v36  ;;  %v195_v38 = vmul.f32 0.5, %v193_v37 }
 0x11c   :  { %471 = vmatprep.subr.mxu1 %v518_v22 }
 0x11d   :  { %472 = vmatpush3.msra.mxu1 %v195_v38 }
 0x11e   :  { %474 = vmatmul.mubr.msk.f32.vlgmr.msra.gmra.mxu1 %vm204_vm3, %v197_v39  ;;  %476 = vmatprep.subr.mxu1 %v518_v22 }
 0x11f   :  { %478 = vmatprep.mubr.msk.f32.mxu1 %vm519_vm1, %v518_v22 }
 0x1de   :  { %v278_v41 = vpop.f32.mrf.mxu1 }
 0x1df   :  { %v279_v42 = vadd.f32 %v278_v41, %v202_v40 }
 0x1e0   :  { %v475_v43 = vpop.f32.mrf.mxu1 }
 0x1e1   :  { %v282_v44 = vmul.f32 0.5, %v279_v42 }
 0x1e3   :  { %491 = vtanh.f32 %v282_v44 }
 0x1f0   :  { %v492_v45 = vpop.eup %491 }
 0x1f1   :  { %v284_v46 = vadd.f32 1.0, %v492_v45 }
 0x1f3   :  { %v285_v47 = vmul.f32 0.5, %v284_v46 }
 0x1f5   :  { %477 = vmatpush3.msra.mxu1 %v285_v47 }
 0x1f6   :  { %479 = vmatmul.mubr.msk.f32.vlgmr.msra.gmra.mxu1 %vm297_vm4, %v286_v48 }
 0x2b6   :  { %v367_v54 = vpop.f32.mrf.mxu1 }
 0x2b7   :  { %v368_v55 = vadd.f32 %v367_v54, %v296_v53 }
 0x2b8   :  { %v480_v56 = vpop.f32.mrf.mxu1 }
 0x2b9   :  { %v371_v57 = vmul.f32 0.5, %v368_v55 }
 0x2bb   :  { %493 = vtanh.f32 %v371_v57 }
 0x2c8   :  { %v494_v58 = vpop.eup %493 }
 0x2c9   :  { %v373_v59 = vadd.f32 1.0, %v494_v58 }
 0x2cb   :  { %v374_v60 = vmul.f32 0.5, %v373_v59 }
 0x2cd   :  { %375 = vst [vmem:[#allocation3] sm:$0x1] %v374_v60 }
 0x2ce   :  { %506 = shalt.err (!%p503_p4)
}
 0x2cf   :  { %385 = dma.vmem_to_hbm [thread:$0]  %s383_s2, 16, %s679_s7, [#allocation4]  }
 0x2d0   :  { %515 = dma.done.wait [#allocation4], 16  }
 0x2d1   :  { %516 = vsyncadd [#allocation4], 4294967280 }
 0x2d2   :  { %389 = vsyncpa [#allocation4], 1 }

</bundles_post_ra>
